<compile_context>
chip_gen: v6e
topology: v6e:2x2x1
jax: 0.10.0
libtpu: 0.0.40
codegen_flags: <defaults>
</compile_context>

<pallas_src>
import functools

import jax
import jax.numpy as jnp
from jax import lax
from jax.experimental import pallas as pl
from jax.experimental.pallas import tpu as pltpu

EPS = 1e-5
LANE = 128
SUBLANE = 8


def _round_up(x, m):
    return (x + m - 1) // m * m


def _fused_unit_kernel(p_ref, w_ref, g_ref, b_ref, o_ref,
                       y_scr, sum_scr, ssq_scr, scale_scr, shift_scr,
                       *, true_m):
    """grid = (phase, m_tile).

    phase 0: matmul tile -> resident VMEM slab; accumulate per-channel sum/ssq.
    phase 1: (first step) fold BN affine from the global stats; every step
             applies scale/shift + ReLU from the resident slab to the output.
    """
    phase = pl.program_id(0)
    i = pl.program_id(1)
    inv_m = 1.0 / true_m

    @pl.when(phase == 0)
    def _():
        @pl.when(i == 0)
        def _():
            sum_scr[...] = jnp.zeros_like(sum_scr)
            ssq_scr[...] = jnp.zeros_like(ssq_scr)

        y = jnp.dot(p_ref[...], w_ref[...], preferred_element_type=jnp.float32)
        y_scr[i] = y
        sum_scr[...] += jnp.sum(y, axis=0, keepdims=True)
        ssq_scr[...] += jnp.sum(y * y, axis=0, keepdims=True)

    @pl.when(phase == 1)
    def _():
        @pl.when(i == 0)
        def _():
            mean = sum_scr[...] * inv_m
            # TODO(synk): one-pass E[y^2]-E[y]^2 can cancel badly for very large
            # M; switch to a shifted/Welford accumulation for production sizes.
            var = jnp.maximum(ssq_scr[...] * inv_m - mean * mean, 0.0)
            scale = g_ref[...] * lax.rsqrt(var + EPS)
            scale_scr[...] = scale
            shift_scr[...] = b_ref[...] - mean * scale

        o_ref[...] = jnp.maximum(
            y_scr[i] * scale_scr[...] + shift_scr[...], 0.0)


def unit_forward(x_nchw, conv_w, conv_b, gamma, beta, *, tm=512):
    """Forward pass of Unit: Conv2d(k=5, s=1, p=1) -> BatchNorm2d(train) -> ReLU.

    conv_b is accepted for interface parity with the PyTorch module but is
    exactly cancelled by the training-mode BatchNorm mean subtraction.
    """
    del conv_b  # mathematically cancelled by BN mean subtraction
    N, Cin, H, W = x_nchw.shape
    Cout = conv_w.shape[0]
    KH = KW = 5
    PAD = 1
    Ho = H + 2 * PAD - KH + 1
    Wo = W + 2 * PAD - KW + 1
    M = N * Ho * Wo
    K = Cin * KH * KW

    # Lane-dense padded sizes (full-lane stores, no masked vst).
    Cp = _round_up(Cout, LANE)
    Kp = _round_up(K, LANE)
    tm = _round_up(max(SUBLANE, min(tm, _round_up(M, SUBLANE))), SUBLANE)
    Mp = _round_up(M, tm)
    n_tiles = Mp // tm

    # --- glue: im2col in bf16 (zero padding=1, stride=1), pad to tiled shapes ---
    x_bf = x_nchw.astype(jnp.bfloat16)
    x_pad = jnp.pad(x_bf, ((0, 0), (0, 0), (PAD, PAD), (PAD, PAD)))
    slabs = [x_pad[:, :, kh:kh + Ho, kw:kw + Wo]
             for kh in range(KH) for kw in range(KW)]
    patches = jnp.stack(slabs, axis=2)                         # (N, Cin, 25, Ho, Wo)
    patches = patches.transpose(0, 3, 4, 1, 2).reshape(M, K)   # K-order = (Cin, kh, kw)
    patches = jnp.pad(patches, ((0, Mp - M), (0, Kp - K)))

    # Weights flattened to (K, Cout), zero-padded lane-dense, bf16 for the MXU.
    w_mat = conv_w.reshape(Cout, K).T.astype(jnp.float32)
    w_mat = jnp.pad(w_mat, ((0, Kp - K), (0, Cp - Cout))).astype(jnp.bfloat16)
    g_pad = jnp.pad(gamma.astype(jnp.float32), (0, Cp - Cout)).reshape(1, Cp)
    b_pad = jnp.pad(beta.astype(jnp.float32), (0, Cp - Cout)).reshape(1, Cp)

    # VMEM budget: resident y slab + double-buffered patch/out tiles + weights.
    vmem_needed = (n_tiles * tm * Cp * 4      # resident conv-output scratch (f32)
                   + 2 * tm * Kp * 2          # patch tiles, bf16, double-buffered
                   + 2 * Kp * Cp * 2          # weight tile, bf16
                   + 2 * tm * Cp * 4          # output tiles, f32
                   + 8 * Cp * 4)              # stats/affine scratch + gamma/beta
    vmem_limit = int(min(max(2 * vmem_needed, 32 * 1024 * 1024),
                         96 * 1024 * 1024))

    kernel = functools.partial(_fused_unit_kernel, true_m=M)

    out_flat = pl.pallas_call(
        kernel,
        out_shape=jax.ShapeDtypeStruct((Mp, Cp), jnp.float32),
        grid_spec=pltpu.PrefetchScalarGridSpec(
            num_scalar_prefetch=0,
            grid=(2, n_tiles),                 # (phase, M tile); phase is outer
            in_specs=[
                # Patch tile i during phase 0; pinned to tile 0 in phase 1
                # (no per-step refetch of unused data).
                pl.BlockSpec((tm, Kp), lambda p, i: (i * (1 - p), 0)),
                pl.BlockSpec((Kp, Cp), lambda p, i: (0, 0)),
                pl.BlockSpec((1, Cp), lambda p, i: (0, 0)),
                pl.BlockSpec((1, Cp), lambda p, i: (0, 0)),
            ],
            # Output pinned to block 0 during phase 0 (never written, never
            # flushed); follows the M tile during phase 1.
            out_specs=pl.BlockSpec((tm, Cp), lambda p, i: (p * i, 0)),
            scratch_shapes=[
                pltpu.VMEM((n_tiles, tm, Cp), jnp.float32),  # resident conv output
                pltpu.VMEM((1, Cp), jnp.float32),            # per-channel sum
                pltpu.VMEM((1, Cp), jnp.float32),            # per-channel sum of squares
                pltpu.VMEM((1, Cp), jnp.float32),            # folded BN scale
                pltpu.VMEM((1, Cp), jnp.float32),            # folded BN shift
            ],
        ),
        compiler_params=pltpu.CompilerParams(
            dimension_semantics=("arbitrary", "arbitrary"),
            vmem_limit_bytes=vmem_limit),
    )(patches, w_mat, g_pad, b_pad)

    # --- glue: slice padding away, back to NCHW (module contract) ---
    # TODO(synk): if the consumer accepts NHWC, drop this transpose (saves one
    # output-sized HBM round trip at production sizes).
    out = out_flat[:M, :Cout].reshape(N, Ho, Wo, Cout).transpose(0, 3, 1, 2)
    return out


if __name__ == "__main__":
    key = jax.random.PRNGKey(0)
    k_x, k_w, k_b = jax.random.split(key, 3)

    N, Cin, H, W = 2, 4, 16, 16
    Cout = 8

    x = jax.random.normal(k_x, (N, Cin, H, W), dtype=jnp.float32)

    # Deterministic parameter init (PyTorch-style uniform bound for conv).
    fan_in = Cin * 5 * 5
    bound = 1.0 / (fan_in ** 0.5)
    conv_w = jax.random.uniform(k_w, (Cout, Cin, 5, 5), jnp.float32, -bound, bound)
    conv_b = jax.random.uniform(k_b, (Cout,), jnp.float32, -bound, bound)
    gamma = jnp.ones((Cout,), jnp.float32)   # BatchNorm2d default affine init
    beta = jnp.zeros((Cout,), jnp.float32)

    # Pure-JAX reference (training-mode BatchNorm with biased variance).
    ref_conv = lax.conv_general_dilated(
        x, conv_w, window_strides=(1, 1), padding=((1, 1), (1, 1)),
        dimension_numbers=("NCHW", "OIHW", "NCHW"),
    ) + conv_b.reshape(1, Cout, 1, 1)
    mu = ref_conv.mean(axis=(0, 2, 3), keepdims=True)
    vr = ((ref_conv - mu) ** 2).mean(axis=(0, 2, 3), keepdims=True)
    ref = jnp.maximum(
        (ref_conv - mu) * lax.rsqrt(vr + EPS) * gamma.reshape(1, Cout, 1, 1)
        + beta.reshape(1, Cout, 1, 1), 0.0)

    Ho = Wo = H + 2 - 5 + 1   # 14

    # Default tm (big tile, single-tile fused path at this size).
    out = jax.block_until_ready(unit_forward(x, conv_w, conv_b, gamma, beta))
    assert out.shape == (N, Cout, Ho, Wo)           # (2, 8, 14, 14)
    assert bool(jnp.all(out >= 0.0))                # ReLU check
    err = float(jnp.max(jnp.abs(out - ref)))
    assert err < 1e-1, f"max abs error {err}"

    # tm=128 exercises the multi-tile phase-0 accumulation + phase-1 apply path.
    out_mt = jax.block_until_ready(
        unit_forward(x, conv_w, conv_b, gamma, beta, tm=128))
    err_mt = float(jnp.max(jnp.abs(out_mt - ref)))
    assert err_mt < 1e-1, f"max abs error (multi-tile) {err_mt}"

    print("KERNEL_OK")
</pallas_src>

<mosaic_0001>
module attributes {stable_mosaic.version = 11 : i64} {
  func.func @_fused_unit_kernel(%arg0: i32, %arg1: i32, %arg2: memref<392x128xbf16, #tpu.memory_space<vmem>>, %arg3: memref<128x128xbf16, #tpu.memory_space<vmem>>, %arg4: memref<1x128xf32, #tpu.memory_space<vmem>>, %arg5: memref<1x128xf32, #tpu.memory_space<vmem>>, %arg6: memref<392x128xf32, #tpu.memory_space<vmem>>, %arg7: memref<1x392x128xf32, #tpu.memory_space<vmem>>, %arg8: memref<1x128xf32, #tpu.memory_space<vmem>>, %arg9: memref<1x128xf32, #tpu.memory_space<vmem>>, %arg10: memref<1x128xf32, #tpu.memory_space<vmem>>, %arg11: memref<1x128xf32, #tpu.memory_space<vmem>>) attributes {dimension_semantics = [#tpu.dimension_semantics<arbitrary>, #tpu.dimension_semantics<arbitrary>], iteration_bounds = array<i64: 2, 1>, scalar_prefetch = 0 : i64, scratch_operands = 5 : i64, tpu.core_type = #tpu.core_type<tc>, window_params = [{transform_indices = @transform_0, window_bounds = array<i64: 392, 128>}, {pipeline_mode = #tpu.pipeline_mode<synchronous>, transform_indices = @transform_1, window_bounds = array<i64: 128, 128>}, {pipeline_mode = #tpu.pipeline_mode<synchronous>, transform_indices = @transform_2, window_bounds = array<i64: 1, 128>}, {pipeline_mode = #tpu.pipeline_mode<synchronous>, transform_indices = @transform_3, window_bounds = array<i64: 1, 128>}, {transform_indices = @transform_4, window_bounds = array<i64: 392, 128>}]} {
    %c0_i32 = arith.constant 0 : i32
    %0 = arith.cmpi eq, %arg0, %c0_i32 : i32
    %1 = arith.extui %0 : i1 to i32
    %c0_i32_0 = arith.constant 0 : i32
    %2 = arith.cmpi ne, %1, %c0_i32_0 : i32
    scf.if %2 {
      %c0_i32_2 = arith.constant 0 : i32
      %6 = arith.cmpi eq, %arg1, %c0_i32_2 : i32
      %7 = arith.extui %6 : i1 to i32
      %c0_i32_3 = arith.constant 0 : i32
      %8 = arith.cmpi ne, %7, %c0_i32_3 : i32
      scf.if %8 {
        %cst_19 = arith.constant 0.000000e+00 : f32
        %27 = vector.broadcast %cst_19 : f32 to vector<1x128xf32>
        %c0_20 = arith.constant 0 : index
        %c0_21 = arith.constant 0 : index
        %28 = vector.load %arg8[%c0_20, %c0_21] : memref<1x128xf32, #tpu.memory_space<vmem>>, vector<1x128xf32>
        tpu.vector_store %arg8[%c0_20, %c0_21], %27 {strides = array<i32>} : memref<1x128xf32, #tpu.memory_space<vmem>>, vector<1x128xf32>,
        %cst_22 = arith.constant 0.000000e+00 : f32
        %29 = vector.broadcast %cst_22 : f32 to vector<1x128xf32>
        %c0_23 = arith.constant 0 : index
        %c0_24 = arith.constant 0 : index
        %30 = vector.load %arg9[%c0_23, %c0_24] : memref<1x128xf32, #tpu.memory_space<vmem>>, vector<1x128xf32>
        tpu.vector_store %arg9[%c0_23, %c0_24], %29 {strides = array<i32>} : memref<1x128xf32, #tpu.memory_space<vmem>>, vector<1x128xf32>,
      } else {
      }
      %c0 = arith.constant 0 : index
      %c0_4 = arith.constant 0 : index
      %9 = vector.load %arg2[%c0, %c0_4] : memref<392x128xbf16, #tpu.memory_space<vmem>>, vector<392x128xbf16>
      %c0_5 = arith.constant 0 : index
      %c0_6 = arith.constant 0 : index
      %10 = vector.load %arg3[%c0_5, %c0_6] : memref<128x128xbf16, #tpu.memory_space<vmem>>, vector<128x128xbf16>
      %cst = arith.constant dense<0.000000e+00> : vector<392x128xf32>
      %11 = tpu.matmul %9, %10, %cst {dimension_numbers = #tpu.dot_dimension_numbers<[1], [0], [0], [1], [0, 0, 1, 1], [], []>} : vector<392x128xbf16>, vector<128x128xbf16>, vector<392x128xf32> -> vector<392x128xf32>
      %12 = arith.index_cast %arg1 : i32 to index
      %c0_7 = arith.constant 0 : index
      %c0_8 = arith.constant 0 : index
      %13 = vector.load %arg7[%12, %c0_7, %c0_8] : memref<1x392x128xf32, #tpu.memory_space<vmem>>, vector<1x392x128xf32>
      %14 = vector.shape_cast %13 : vector<1x392x128xf32> to vector<392x128xf32>
      %15 = vector.shape_cast %11 : vector<392x128xf32> to vector<1x392x128xf32>
      tpu.vector_store %arg7[%12, %c0_7, %c0_8], %15 {strides = array<i32>} : memref<1x392x128xf32, #tpu.memory_space<vmem>>, vector<1x392x128xf32>,
      %c0_9 = arith.constant 0 : index
      %c0_10 = arith.constant 0 : index
      %16 = vector.load %arg8[%c0_9, %c0_10] : memref<1x128xf32, #tpu.memory_space<vmem>>, vector<1x128xf32>
      %cst_11 = arith.constant dense<0.000000e+00> : vector<128xf32>
      %17 = vector.multi_reduction <add>, %11, %cst_11 [0] : vector<392x128xf32> to vector<128xf32>
      %18 = vector.shape_cast %17 : vector<128xf32> to vector<1x128xf32>
      %19 = arith.addf %16, %18 : vector<1x128xf32>
      %c0_12 = arith.constant 0 : index
      %c0_13 = arith.constant 0 : index
      %20 = vector.load %arg8[%c0_12, %c0_13] : memref<1x128xf32, #tpu.memory_space<vmem>>, vector<1x128xf32>
      tpu.vector_store %arg8[%c0_12, %c0_13], %19 {strides = array<i32>} : memref<1x128xf32, #tpu.memory_space<vmem>>, vector<1x128xf32>,
      %c0_14 = arith.constant 0 : index
      %c0_15 = arith.constant 0 : index
      %21 = vector.load %arg9[%c0_14, %c0_15] : memref<1x128xf32, #tpu.memory_space<vmem>>, vector<1x128xf32>
      %22 = arith.mulf %11, %11 : vector<392x128xf32>
      %cst_16 = arith.constant dense<0.000000e+00> : vector<128xf32>
      %23 = vector.multi_reduction <add>, %22, %cst_16 [0] : vector<392x128xf32> to vector<128xf32>
      %24 = vector.shape_cast %23 : vector<128xf32> to vector<1x128xf32>
      %25 = arith.addf %21, %24 : vector<1x128xf32>
      %c0_17 = arith.constant 0 : index
      %c0_18 = arith.constant 0 : index
      %26 = vector.load %arg9[%c0_17, %c0_18] : memref<1x128xf32, #tpu.memory_space<vmem>>, vector<1x128xf32>
      tpu.vector_store %arg9[%c0_17, %c0_18], %25 {strides = array<i32>} : memref<1x128xf32, #tpu.memory_space<vmem>>, vector<1x128xf32>,
    } else {
    }
    %c1_i32 = arith.constant 1 : i32
    %3 = arith.cmpi eq, %arg0, %c1_i32 : i32
    %4 = arith.extui %3 : i1 to i32
    %c0_i32_1 = arith.constant 0 : i32
    %5 = arith.cmpi ne, %4, %c0_i32_1 : i32
    scf.if %5 {
      %c0_i32_2 = arith.constant 0 : i32
      %6 = arith.cmpi eq, %arg1, %c0_i32_2 : i32
      %7 = arith.extui %6 : i1 to i32
      %c0_i32_3 = arith.constant 0 : i32
      %8 = arith.cmpi ne, %7, %c0_i32_3 : i32
      scf.if %8 {
        %c0_11 = arith.constant 0 : index
        %c0_12 = arith.constant 0 : index
        %21 = vector.load %arg8[%c0_11, %c0_12] : memref<1x128xf32, #tpu.memory_space<vmem>>, vector<1x128xf32>
        %cst_13 = arith.constant 0.00255102036 : f32
        %22 = vector.broadcast %cst_13 : f32 to vector<1x128xf32>
        %23 = arith.mulf %21, %22 : vector<1x128xf32>
        %c0_14 = arith.constant 0 : index
        %c0_15 = arith.constant 0 : index
        %24 = vector.load %arg9[%c0_14, %c0_15] : memref<1x128xf32, #tpu.memory_space<vmem>>, vector<1x128xf32>
        %cst_16 = arith.constant 0.00255102036 : f32
        %25 = vector.broadcast %cst_16 : f32 to vector<1x128xf32>
        %26 = arith.mulf %24, %25 : vector<1x128xf32>
        %27 = arith.mulf %23, %23 : vector<1x128xf32>
        %28 = arith.subf %26, %27 : vector<1x128xf32>
        %cst_17 = arith.constant 0.000000e+00 : f32
        %29 = vector.broadcast %cst_17 : f32 to vector<1x128xf32>
        %30 = arith.maximumf %28, %29 : vector<1x128xf32>
        %c0_18 = arith.constant 0 : index
        %c0_19 = arith.constant 0 : index
        %31 = vector.load %arg4[%c0_18, %c0_19] : memref<1x128xf32, #tpu.memory_space<vmem>>, vector<1x128xf32>
        %cst_20 = arith.constant 9.99999974E-6 : f32
        %32 = vector.broadcast %cst_20 : f32 to vector<1x128xf32>
        %33 = arith.addf %30, %32 : vector<1x128xf32>
        %34 = math.rsqrt %33 : vector<1x128xf32>
        %35 = arith.mulf %31, %34 : vector<1x128xf32>
        %c0_21 = arith.constant 0 : index
        %c0_22 = arith.constant 0 : index
        %36 = vector.load %arg10[%c0_21, %c0_22] : memref<1x128xf32, #tpu.memory_space<vmem>>, vector<1x128xf32>
        tpu.vector_store %arg10[%c0_21, %c0_22], %35 {strides = array<i32>} : memref<1x128xf32, #tpu.memory_space<vmem>>, vector<1x128xf32>,
        %c0_23 = arith.constant 0 : index
        %c0_24 = arith.constant 0 : index
        %37 = vector.load %arg5[%c0_23, %c0_24] : memref<1x128xf32, #tpu.memory_space<vmem>>, vector<1x128xf32>
        %38 = arith.mulf %23, %35 : vector<1x128xf32>
        %39 = arith.subf %37, %38 : vector<1x128xf32>
        %c0_25 = arith.constant 0 : index
        %c0_26 = arith.constant 0 : index
        %40 = vector.load %arg11[%c0_25, %c0_26] : memref<1x128xf32, #tpu.memory_space<vmem>>, vector<1x128xf32>
        tpu.vector_store %arg11[%c0_25, %c0_26], %39 {strides = array<i32>} : memref<1x128xf32, #tpu.memory_space<vmem>>, vector<1x128xf32>,
      } else {
      }
      %9 = arith.index_cast %arg1 : i32 to index
      %c0 = arith.constant 0 : index
      %c0_4 = arith.constant 0 : index
      %10 = vector.load %arg7[%9, %c0, %c0_4] : memref<1x392x128xf32, #tpu.memory_space<vmem>>, vector<1x392x128xf32>
      %11 = vector.shape_cast %10 : vector<1x392x128xf32> to vector<392x128xf32>
      %c0_5 = arith.constant 0 : index
      %c0_6 = arith.constant 0 : index
      %12 = vector.load %arg10[%c0_5, %c0_6] : memref<1x128xf32, #tpu.memory_space<vmem>>, vector<1x128xf32>
      %13 = vector.broadcast %12 : vector<1x128xf32> to vector<392x128xf32>
      %14 = arith.mulf %11, %13 : vector<392x128xf32>
      %c0_7 = arith.constant 0 : index
      %c0_8 = arith.constant 0 : index
      %15 = vector.load %arg11[%c0_7, %c0_8] : memref<1x128xf32, #tpu.memory_space<vmem>>, vector<1x128xf32>
      %16 = vector.broadcast %15 : vector<1x128xf32> to vector<392x128xf32>
      %17 = arith.addf %14, %16 : vector<392x128xf32>
      %cst = arith.constant 0.000000e+00 : f32
      %18 = vector.broadcast %cst : f32 to vector<392x128xf32>
      %19 = arith.maximumf %17, %18 : vector<392x128xf32>
      %c0_9 = arith.constant 0 : index
      %c0_10 = arith.constant 0 : index
      %20 = vector.load %arg6[%c0_9, %c0_10] : memref<392x128xf32, #tpu.memory_space<vmem>>, vector<392x128xf32>
      tpu.vector_store %arg6[%c0_9, %c0_10], %19 {strides = array<i32>} : memref<392x128xf32, #tpu.memory_space<vmem>>, vector<392x128xf32>,
    } else {
    }
    return
  }
  func.func @transform_0(%arg0: i32, %arg1: i32) -> (i32, i32) {
    %c1_i32 = arith.constant 1 : i32
    %0 = arith.subi %c1_i32, %arg0 : i32
    %1 = arith.muli %arg1, %0 : i32
    %c0_i32 = arith.constant 0 : i32
    %c0_i32_0 = arith.constant 0 : i32
    return %1, %c0_i32 : i32, i32
  }
  func.func @transform_1(%arg0: i32, %arg1: i32) -> (i32, i32) {
    %c0_i32 = arith.constant 0 : i32
    %c0_i32_0 = arith.constant 0 : i32
    %c0_i32_1 = arith.constant 0 : i32
    return %c0_i32, %c0_i32_0 : i32, i32
  }
  func.func @transform_2(%arg0: i32, %arg1: i32) -> (i32, i32) {
    %c0_i32 = arith.constant 0 : i32
    %c0_i32_0 = arith.constant 0 : i32
    %c0_i32_1 = arith.constant 0 : i32
    return %c0_i32, %c0_i32_0 : i32, i32
  }
  func.func @transform_3(%arg0: i32, %arg1: i32) -> (i32, i32) {
    %c0_i32 = arith.constant 0 : i32
    %c0_i32_0 = arith.constant 0 : i32
    %c0_i32_1 = arith.constant 0 : i32
    return %c0_i32, %c0_i32_0 : i32, i32
  }
  func.func @transform_4(%arg0: i32, %arg1: i32) -> (i32, i32) {
    %0 = arith.muli %arg0, %arg1 : i32
    %c0_i32 = arith.constant 0 : i32
    %c0_i32_0 = arith.constant 0 : i32
    return %0, %c0_i32 : i32, i32
  }
}

</mosaic_0001>

<bundles_post_ra>
// kernel: tpu_custom_call.1
= control target key start
LH: loop header
LB: loop body
LE: loop exit
PB: predicated region body
PF: predicated region fallthrough
CT: control target
= control target key end

     0   :  { %9 = vsyncpa [#allocation8], 0  ;;  %s2329_s0 = inlined_call_operand.hbm [shape: bf16[392,128], index: 0, kind: input, shape index: {}]   ;;  %s2330_s1 = inlined_call_operand.hbm [shape: bf16[128,128], index: 1, kind: input, shape index: {}]   ;;  %s2331_s2 = inlined_call_operand.vmem [shape: f32[1,128], index: 2, kind: input, shape index: {}]   ;;  %s2332_s3 = inlined_call_operand.vmem [shape: f32[1,128], index: 3, kind: input, shape index: {}]   ;;  %s2333_s4 = inlined_call_operand.hbm [shape: f32[392,128], index: 4, kind: output, shape index: {}]  }
   0x1   :  { %11 = vsyncpa [#allocation8 + $0x1], 0 }
   0x2   :  { %12 = vsyncpa [#allocation11], 0 }
   0x3   :  { %13 = vsyncpa [#allocation9], 0 }
   0x4   :  { %15 = vsyncpa [#allocation9 + $0x1], 0  ;;  %s1830_s15 = smov 0   ;;  %s1832_s16 = smov 0  }
   0x5   :  { %s1834_s17 = smov 0  }
   0x6 LB: > { %s1369_s18 = sadd.s32 4294967295, %s1794_s17   ;;  %s1370_s19 = sadd.s32 4294967294, %s1794_s17   ;;  %s1794_s17 = sphi %s1834_s17, %s21_s17   ;;  %s1790_s16 = sphi %s1832_s16, %s2341_s16   ;;  %s1786_s15 = sphi %s1830_s15, %s2340_s15  }
   0x7   : > { %s33_s20 = sadd.s32 1, %s1790_s16  ;;  %p1371_p0 = scmp.ge.s32.totalorder %s1794_s17, 1 }
   0x8   : > { %p35_p1 = scmp.ge.s32.totalorder %s33_s20, 2  ;;  %p159_p2 = scmp.lt.s32.totalorder %s1794_s17, 3 }
   0x9   : > { %p1852_p3 = scmp.eq.s32.totalorder %s1369_s18, 0  ;;  %s1796_s23 = smov [#allocation10]  }
   0xa   : > { %s2343_s20 = smov (%p35_p1, %s33_s20), 0  ;;  %p1858_p4 = pnand %p1371_p0, %p159_p2 }
   0xb   : > { %s171_s24 = sshll.u32 %s1796_s23, 4  ;;  %p1373_p6 = scmp.ge.s32.totalorder %s1794_s17, 2  ;;  %s172_s24 = int_to_ptr.vmem [resolvable:$true] %s171_s24 }
   0xc   : > { %s2336_s22 = scalar_select %p1858_p4, 1, 0 }
   0xd   : > { %p1596_p5 = pneg %p1858_p4  ;;  %p1609_p8 = scmp.lt.s32.totalorder %s1794_s17, 2 }
   0xe   : > { %p1610_p9 = scmp.eq.s32.totalorder %s1794_s17, 0  ;;  %s1695_s26 = scalar_lea.vmem %s172_s24, 1024 }
   0xf   : > { %p1867_p7 = pnand %p1852_p3, %p1596_p5  ;;  %p1696_p11 = scmp.ne.s32.totalorder %s172_s24, %s1695_s26 }
  0x10   : > { %p1703_p0 = scmp.lt.s32.totalorder %s172_s24, %s172_s24  ;;  %p1704_p1 = scmp.lt.s32.totalorder %s1695_s26, %s1695_s26 }
  0x11   : > { %p1686_p10 = pneg %p1867_p7 }
  0x12   : > { %p1705_p2 = por %p1704_p1, %p1703_p0 }
  0x13   : > { %p1698_p12 = pnand %p1696_p11, %p1686_p10 }
  0x15   : > { %p1699_p13 = pneg %p1698_p12 }
  0x17   : > { %p1706_p4 = pnand %p1705_p2, %p1699_p13 }
  0x19   : > { %1709 = shalt.err (!%p1706_p4)
}
  0x1a   : > { %s1797_s27 = smov 64   ;;  %s1798_s28 = smov 4  }
  0x1b   : > { %1599 = dma.hbm_to_vmem [thread:$0]  (!%p1867_p7), %s2330_s1, 1024, %s172_s24, [#allocation11], %s1797_s27, %s1797_s27, %s1798_s28  }
  0x1c   : > { %s1799_s5 = smov [#allocation7]   ;;  %p1601_p5 = pnand %p1610_p9, %p1609_p8 }
  0x1d   : > { %s204_s6 = sshll.u32 %s1799_s5, 4  ;;  %s205_s6 = int_to_ptr.vmem [resolvable:$true] %s204_s6 }
  0x1e   : > { %p1712_p10 = pneg %p1601_p5  ;;  %s1721_s7 = scalar_lea.vmem %s205_s6, 3136 }
  0x1f   : > { %p1722_p11 = scmp.ne.s32.totalorder %s205_s6, %s1721_s7  ;;  %s1728_s8 = scalar_lea.vmem %s205_s6, 6272 }
  0x20   : > { %p1729_p13 = scmp.lt.s32.totalorder %s205_s6, %s205_s6  ;;  %p1730_p0 = scmp.lt.s32.totalorder %s1728_s8, %s1721_s7 }
  0x21   : > { %p1724_p4 = pnand %p1722_p11, %p1712_p10 }
  0x22   : > { %p1731_p1 = por %p1730_p0, %p1729_p13 }
  0x23   : > { %p1725_p12 = pneg %p1724_p4 }
  0x25   : > { %p1732_p2 = pnand %p1731_p1, %p1725_p12 }
  0x27   : > { %1735 = shalt.err (!%p1732_p2)
}
  0x28   : > { %1603 = dma.hbm_to_vmem [thread:$0]  (!%p1601_p5), %s2329_s0, 3136, %s205_s6, [#allocation8], %s1797_s27, %s1797_s27, %s1798_s28  }
  0x29   : > { %p2338_p7 = scmp.ne.s32.totalorder %s2336_s22, 0 }
  0x2b   : > { %216 = sbr.rel (%p2338_p7) target bundleno = 552 (0x228), region = 36 }
  0x30   : > { %1773 = dma.done.wait (%p1852_p3), [#allocation8], 3136  }
  0x31   : > { %1775 = vsyncadd (%p1852_p3), [#allocation8], 4294964160 }
  0x32   : > { %1777 = dma.done.wait (%p1852_p3), [#allocation11], 1024  }
  0x33   : > { %1779 = vsyncadd (%p1852_p3), [#allocation11], 4294966272  ;;  %p1378_p8 = scmp.ne.s32.totalorder %s1786_s15, 0 }
  0x35   : > { %260 = sbr.rel (%p1378_p8) target bundleno = 449 (0x1c1), region = 48 }
  0x3a   : > { %v1649_v0 = vld [vmem:[#allocation10 + $0x38] sm:$0xff]   ;;  %v1800_v1 = vmov 0.0   ;;  %v1650_v2 = vld [vmem:[#allocation10 + $0x30] sm:$0xff]   ;;  %vm1801_vm0 = vmmov 0   ;;  %v1651_v3 = vld [vmem:[#allocation10 + $0x28] sm:$0xff]  }
  0x3b   : > { %1452 = vmatprep.subr.bf16.mxu0 %v1800_v1  ;;  %265 = vst [vmem:[#allocation3] sm:$0x1] %v1800_v1  ;;  %266 = vst [vmem:[#allocation4] sm:$0x1] %v1800_v1  ;;  %1568 = vmatprep.subr.bf16.mxu1 %v1800_v1  ;;  %v1652_v4 = vld [vmem:[#allocation10 + $0x20] sm:$0xff]   ;;  %v1653_v5 = vld [vmem:[#allocation10 + $0x18] sm:$0xff]  }
  0x3c   : > { %1453 = vmatpush3.bf16.msra.mxu0 %v1649_v0  ;;  %1468 = vmatprep.mubr.msk.bf16.mxu0 %vm1801_vm0, %v1800_v1  ;;  %v1654_v6 = vld [vmem:[#allocation10 + $0x10] sm:$0xff]   ;;  %v1655_v7 = vld [vmem:[#allocation10 + $0x8] sm:$0xff]   ;;  %v1656_v8 = vld [vmem:[#allocation10] sm:$0xff]  }
  0x3d   : > { %1454 = vmatprep.subr.bf16.mxu0 %v1800_v1  ;;  %1576 = vmatpush3.bf16.msra.mxu1 %v1649_v0  ;;  %v1657_v9 = vld [vmem:[#allocation7] sm:$0xff]   ;;  %v1664_v10 = vld [vmem:[#allocation7 + $0x68] sm:$0xff]   ;;  %v1666_v12 = vld [vmem:[#allocation7 + $0x70] sm:$0xff]  }
  0x3e   : > { %1569 = vmatprep.subr.bf16.mxu1 %v1800_v1  ;;  %1520 = vmatprep.mubr.msk.bf16.mxu1 %vm1801_vm0, %v1800_v1  ;;  %v1658_v11 = vld [vmem:[#allocation7 + $0x8] sm:$0xff]   ;;  %v1659_v13 = vld [vmem:[#allocation7 + $0x10] sm:$0xff]   ;;  %v1668_v14 = vld [vmem:[#allocation7 + $0x78] sm:$0xff]  }
  0x3f   : > { %v1660_v15 = vld [vmem:[#allocation7 + $0x18] sm:$0xff]   ;;  %v1670_v16 = vld [vmem:[#allocation7 + $0x80] sm:$0xff]   ;;  %v1672_v18 = vld [vmem:[#allocation7 + $0x88] sm:$0xff]  }
  0x40   : > { %1455 = vmatpush3.bf16.msra.mxu0 %v1650_v2  ;;  %v1661_v17 = vld [vmem:[#allocation7 + $0x20] sm:$0xff]   ;;  %v1662_v19 = vld [vmem:[#allocation7 + $0x28] sm:$0xff]   ;;  %v1674_v20 = vld [vmem:[#allocation7 + $0x90] sm:$0xff]  }
  0x41   : > { %1456 = vmatprep.subr.bf16.mxu0 %v1800_v1  ;;  %1577 = vmatpush3.bf16.msra.mxu1 %v1650_v2  ;;  %v1663_v21 = vld [vmem:[#allocation7 + $0x30] sm:$0xff]   ;;  %v1676_v22 = vld [vmem:[#allocation7 + $0x98] sm:$0xff]   ;;  %v1677_v24 = vld [vmem:[#allocation7 + $0xa0] sm:$0xff]  }
  0x42   : > { %1570 = vmatprep.subr.bf16.mxu1 %v1800_v1  ;;  %v1665_v23 = vld [vmem:[#allocation7 + $0x38] sm:$0xff]   ;;  %v1667_v25 = vld [vmem:[#allocation7 + $0x40] sm:$0xff]   ;;  %v1678_v26 = vld [vmem:[#allocation7 + $0xa8] sm:$0xff]  }
  0x43   : > { %v1669_v27 = vld [vmem:[#allocation7 + $0x48] sm:$0xff]   ;;  %v1679_v28 = vld [vmem:[#allocation7 + $0xb0] sm:$0xff]   ;;  %v1680_v30 = vld [vmem:[#allocation7 + $0xb8] sm:$0xff]  }
  0x44   : > { %1457 = vmatpush3.bf16.msra.mxu0 %v1651_v3  ;;  %v1671_v29 = vld [vmem:[#allocation7 + $0x50] sm:$0xff]   ;;  %v1673_v31 = vld [vmem:[#allocation7 + $0x58] sm:$0xff]   ;;  %v1681_v32 = vld [vmem:[#allocation7 + $0xc0] ss:$0 sps:$4 sm:$0xff]  }
  0x45   : > { %1458 = vmatprep.subr.bf16.mxu0 %v1800_v1  ;;  %1578 = vmatpush3.bf16.msra.mxu1 %v1651_v3  ;;  %v1675_v33 = vld [vmem:[#allocation7 + $0x60] sm:$0xff]  }
  0x46   : > { %1571 = vmatprep.subr.bf16.mxu1 %v1800_v1 }
  0x48   : > { %1459 = vmatpush3.bf16.msra.mxu0 %v1652_v4 }
  0x49   : > { %1460 = vmatprep.subr.bf16.mxu0 %v1800_v1  ;;  %1579 = vmatpush3.bf16.msra.mxu1 %v1652_v4 }
  0x4a   : > { %1572 = vmatprep.subr.bf16.mxu1 %v1800_v1 }
  0x4c   : > { %1461 = vmatpush3.bf16.msra.mxu0 %v1653_v5 }
  0x4d   : > { %1462 = vmatprep.subr.bf16.mxu0 %v1800_v1  ;;  %1580 = vmatpush3.bf16.msra.mxu1 %v1653_v5 }
  0x4e   : > { %1573 = vmatprep.subr.bf16.mxu1 %v1800_v1 }
  0x50   : > { %1463 = vmatpush3.bf16.msra.mxu0 %v1654_v6 }
  0x51   : > { %1464 = vmatprep.subr.bf16.mxu0 %v1800_v1  ;;  %1581 = vmatpush3.bf16.msra.mxu1 %v1654_v6 }
  0x52   : > { %1574 = vmatprep.subr.bf16.mxu1 %v1800_v1 }
  0x54   : > { %1465 = vmatpush3.bf16.msra.mxu0 %v1655_v7 }
  0x55   : > { %1466 = vmatprep.subr.bf16.mxu0 %v1800_v1  ;;  %1582 = vmatpush3.bf16.msra.mxu1 %v1655_v7 }
  0x56   : > { %1575 = vmatprep.subr.bf16.mxu1 %v1800_v1 }
  0x58   : > { %1467 = vmatpush3.bf16.msra.mxu0 %v1656_v8 }
  0x59   : > { %1583 = vmatpush3.bf16.msra.mxu1 %v1656_v8 }
  0x5b   : > { %1469 = vmatmul.mubr.bf16.vlgmr.msra.gmra.mxu0 %v1657_v9 }
  0x5c   : > { %1472 = vmatprep.mubr.msk.bf16.mxu0 %vm1801_vm0, %v1800_v1  ;;  %1521 = vmatmul.mubr.bf16.vlgmr.msra.gmra.mxu1 %v1664_v10 }
  0x5d   : > { %1524 = vmatprep.mubr.msk.bf16.mxu1 %vm1801_vm0, %v1800_v1 }
  0x63   : > { %1473 = vmatmul.mubr.bf16.gmra.mxu0 %v1658_v11 }
  0x64   : > { %1476 = vmatprep.mubr.msk.bf16.mxu0 %vm1801_vm0, %v1800_v1  ;;  %1525 = vmatmul.mubr.bf16.gmra.mxu1 %v1666_v12 }
  0x65   : > { %1528 = vmatprep.mubr.msk.bf16.mxu1 %vm1801_vm0, %v1800_v1 }
  0x6b   : > { %1477 = vmatmul.mubr.bf16.gmra.mxu0 %v1659_v13 }
  0x6c   : > { %1480 = vmatprep.mubr.msk.bf16.mxu0 %vm1801_vm0, %v1800_v1  ;;  %1529 = vmatmul.mubr.bf16.gmra.mxu1 %v1668_v14 }
  0x6d   : > { %1532 = vmatprep.mubr.msk.bf16.mxu1 %vm1801_vm0, %v1800_v1 }
  0x73   : > { %1481 = vmatmul.mubr.bf16.gmra.mxu0 %v1660_v15 }
  0x74   : > { %1484 = vmatprep.mubr.msk.bf16.mxu0 %vm1801_vm0, %v1800_v1  ;;  %1533 = vmatmul.mubr.bf16.gmra.mxu1 %v1670_v16 }
  0x75   : > { %1536 = vmatprep.mubr.msk.bf16.mxu1 %vm1801_vm0, %v1800_v1 }
  0x7b   : > { %1485 = vmatmul.mubr.bf16.gmra.mxu0 %v1661_v17 }
  0x7c   : > { %1488 = vmatprep.mubr.msk.bf16.mxu0 %vm1801_vm0, %v1800_v1  ;;  %1537 = vmatmul.mubr.bf16.gmra.mxu1 %v1672_v18 }
  0x7d   : > { %1540 = vmatprep.mubr.msk.bf16.mxu1 %vm1801_vm0, %v1800_v1 }
  0x83   : > { %1489 = vmatmul.mubr.bf16.gmra.mxu0 %v1662_v19 }
  0x84   : > { %1492 = vmatprep.mubr.msk.bf16.mxu0 %vm1801_vm0, %v1800_v1  ;;  %1541 = vmatmul.mubr.bf16.gmra.mxu1 %v1674_v20 }
  0x85   : > { %1544 = vmatprep.mubr.msk.bf16.mxu1 %vm1801_vm0, %v1800_v1 }
  0x8b   : > { %1493 = vmatmul.mubr.bf16.gmra.mxu0 %v1663_v21 }
  0x8c   : > { %1496 = vmatprep.mubr.msk.bf16.mxu0 %vm1801_vm0, %v1800_v1  ;;  %1545 = vmatmul.mubr.bf16.gmra.mxu1 %v1676_v22 }
  0x8d   : > { %1548 = vmatprep.mubr.msk.bf16.mxu1 %vm1801_vm0, %v1800_v1 }
  0x93   : > { %1497 = vmatmul.mubr.bf16.gmra.mxu0 %v1665_v23 }
  0x94   : > { %1500 = vmatprep.mubr.msk.bf16.mxu0 %vm1801_vm0, %v1800_v1  ;;  %1549 = vmatmul.mubr.bf16.gmra.mxu1 %v1677_v24 }
  0x95   : > { %1552 = vmatprep.mubr.msk.bf16.mxu1 %vm1801_vm0, %v1800_v1 }
  0x9b   : > { %1501 = vmatmul.mubr.bf16.gmra.mxu0 %v1667_v25 }
  0x9c   : > { %1504 = vmatprep.mubr.msk.bf16.mxu0 %vm1801_vm0, %v1800_v1  ;;  %1553 = vmatmul.mubr.bf16.gmra.mxu1 %v1678_v26 }
  0x9d   : > { %1556 = vmatprep.mubr.msk.bf16.mxu1 %vm1801_vm0, %v1800_v1 }
  0xa3   : > { %1505 = vmatmul.mubr.bf16.gmra.mxu0 %v1669_v27 }
  0xa4   : > { %1508 = vmatprep.mubr.msk.bf16.mxu0 %vm1801_vm0, %v1800_v1  ;;  %1557 = vmatmul.mubr.bf16.gmra.mxu1 %v1679_v28 }
  0xa5   : > { %1560 = vmatprep.mubr.msk.bf16.mxu1 %vm1801_vm0, %v1800_v1 }
  0xab   : > { %1509 = vmatmul.mubr.bf16.gmra.mxu0 %v1671_v29 }
  0xac   : > { %1512 = vmatprep.mubr.msk.bf16.mxu0 %vm1801_vm0, %v1800_v1  ;;  %1561 = vmatmul.mubr.bf16.gmra.mxu1 %v1680_v30 }
  0xad   : > { %1564 = vmatprep.mubr.msk.bf16.mxu1 %vm1801_vm0, %v1800_v1 }
  0xb3   : > { %1513 = vmatmul.mubr.bf16.gmra.mxu0 %v1673_v31 }
  0xb4   : > { %1516 = vmatprep.mubr.msk.bf16.mxu0 %vm1801_vm0, %v1800_v1  ;;  %1565 = vmatmul.mubr.bf16.gmra.mxu1 %v1681_v32 }
  0xbb   : > { %1517 = vmatmul.mubr.bf16.gmra.mxu0 %v1675_v33 }
 0x11b   : > { %v1966_v34 = vpop.f32.mrf.mxu0 }
 0x11c   : > { %762 = vst [vmem:[#allocation2 + $0xb0] sm:$0xff] %v1966_v34  ;;  %v1969_v35 = vpop.f32.mrf.mxu1  ;;  %v869_v24 = vmul.f32 %v1966_v34, %v1966_v34 }
 0x11d   : > { %v1470_v36 = vpop.f32.mrf.mxu0  ;;  %788 = vst [vmem:[#allocation2 + $0x20] sm:$0xff] %v1969_v35 }
 0x11e   : > { %v1522_v37 = vpop.f32.mrf.mxu1 }
 0x11f   : > { %v1972_v38 = vpop.f32.mrf.mxu0 }
 0x120   : > { %763 = vst [vmem:[#allocation2 + $0xd0] sm:$0xff] %v1972_v38  ;;  %v1975_v39 = vpop.f32.mrf.mxu1  ;;  %v870_v21 = vmul.f32 %v1972_v38, %v1972_v38  ;;  %v812_v25 = vadd.f32 %v1972_v38, %v1966_v34 }
 0x121   : > { %v1471_v40 = vpop.f32.mrf.mxu0  ;;  %789 = vst [vmem:[#allocation2 + $0x88] sm:$0xff] %v1975_v39 }
 0x122   : > { %v1523_v41 = vpop.f32.mrf.mxu1  ;;  %v918_v29 = vadd.f32 %v870_v21, %v869_v24 }
 0x123   : > { %v1978_v42 = vpop.f32.mrf.mxu0 }
 0x124   : > { %764 = vst [vmem:[#allocation2 + $0x10] sm:$0xff] %v1978_v42  ;;  %v1981_v43 = vpop.f32.mrf.mxu1  ;;  %v871_v26 = vmul.f32 %v1978_v42, %v1978_v42  ;;  %v813_v30 = vadd.f32 %v812_v25, %v1978_v42 }
 0x125   : > { %v1474_v44 = vpop.f32.mrf.mxu0  ;;  %790 = vst [vmem:[#allocation2 + $0xa0] sm:$0xff] %v1981_v43 }
 0x126   : > { %v1526_v45 = vpop.f32.mrf.mxu1  ;;  %v919_v34 = vadd.f32 %v918_v29, %v871_v26 }
 0x127   : > { %v1984_v46 = vpop.f32.mrf.mxu0 }
 0x128   : > { %765 = vst [vmem:[#allocation2 + $0x48] sm:$0xff] %v1984_v46  ;;  %v1987_v47 = vpop.f32.mrf.mxu1  ;;  %v872_v31 = vmul.f32 %v1984_v46, %v1984_v46  ;;  %v814_v36 = vadd.f32 %v813_v30, %v1984_v46 }
 0x129   : > { %v1475_v48 = vpop.f32.mrf.mxu0  ;;  %791 = vst [vmem:[#allocation2 + $0x170] sm:$0xff] %v1987_v47 }
 0x12a   : > { %v1527_v49 = vpop.f32.mrf.mxu1  ;;  %v920_v41 = vadd.f32 %v919_v34, %v872_v31 }
 0x12b   : > { %v1990_v50 = vpop.f32.mrf.mxu0 }
 0x12c   : > { %766 = vst [vmem:[#allocation2 + $0x160] sm:$0xff] %v1990_v50  ;;  %v1993_v51 = vpop.f32.mrf.mxu1  ;;  %v873_v37 = vmul.f32 %v1990_v50, %v1990_v50  ;;  %v815_v42 = vadd.f32 %v814_v36, %v1990_v50 }
 0x12d   : > { %v1478_v52 = vpop.f32.mrf.mxu0  ;;  %792 = vst [vmem:[#allocation2 + $0xf0] sm:$0xff] %v1993_v51 }
 0x12e   : > { %v1530_v53 = vpop.f32.mrf.mxu1  ;;  %v921_v49 = vadd.f32 %v920_v41, %v873_v37 }
 0x12f   : > { %v1996_v54 = vpop.f32.mrf.mxu0 }
 0x130   : > { %767 = vst [vmem:[#allocation2 + $0x128] sm:$0xff] %v1996_v54  ;;  %v1999_v55 = vpop.f32.mrf.mxu1  ;;  %v874_v44 = vmul.f32 %v1996_v54, %v1996_v54  ;;  %v816_v46 = vadd.f32 %v815_v42, %v1996_v54 }
 0x131   : > { %v1479_v56 = vpop.f32.mrf.mxu0  ;;  %793 = vst [vmem:[#allocation2 + $0x140] sm:$0xff] %v1999_v55 }
 0x132   : > { %v1531_v57 = vpop.f32.mrf.mxu1 }
 0x133   : > { %v2002_v58 = vpop.f32.mrf.mxu0  ;;  %v922_v57 = vadd.f32 %v921_v49, %v874_v44 }
 0x134   : > { %768 = vst [vmem:[#allocation2 + $0x40] sm:$0xff] %v2002_v58  ;;  %v2005_v59 = vpop.f32.mrf.mxu1  ;;  %v875_v52 = vmul.f32 %v2002_v58, %v2002_v58  ;;  %v817_v50 = vadd.f32 %v816_v46, %v2002_v58 }
 0x135   : > { %v1482_v60 = vpop.f32.mrf.mxu0  ;;  %794 = vst [vmem:[#allocation2 + $0x50] sm:$0xff] %v2005_v59 }
 0x136   : > { %v1534_v61 = vpop.f32.mrf.mxu1 }
 0x137   : > { %v2008_v62 = vpop.f32.mrf.mxu0 }
 0x138   : > { %769 = vst [vmem:[#allocation2 + $0x178] sm:$0xff] %v2008_v62  ;;  %v2011_v63 = vpop.f32.mrf.mxu1  ;;  %v876_v60 = vmul.f32 %v2008_v62, %v2008_v62  ;;  %v818_v54 = vadd.f32 %v817_v50, %v2008_v62 }
 0x139   : > { %v1483_v0 = vpop.f32.mrf.mxu0  ;;  %795 = vst [vmem:[#allocation2 + $0x80] sm:$0xff] %v2011_v63 }
 0x13a   : > { %v1535_v1 = vpop.f32.mrf.mxu1 }
 0x13b   : > { %v2014_v2 = vpop.f32.mrf.mxu0  ;;  %v923_v1 = vadd.f32 %v922_v57, %v875_v52 }
 0x13c   : > { %770 = vst [vmem:[#allocation2 + $0x108] sm:$0xff] %v2014_v2  ;;  %v2017_v3 = vpop.f32.mrf.mxu1  ;;  %v819_v58 = vadd.f32 %v818_v54, %v2014_v2 }
 0x13d   : > { %v1486_v4 = vpop.f32.mrf.mxu0  ;;  %796 = vst [vmem:[#allocation2 + $0x28] sm:$0xff] %v2017_v3 }
 0x13e   : > { %v1538_v5 = vpop.f32.mrf.mxu1  ;;  %v877_v4 = vmul.f32 %v2014_v2, %v2014_v2 }
 0x13f   : > { %v2020_v6 = vpop.f32.mrf.mxu0 }
 0x140   : > { %771 = vst [vmem:[#allocation2 + $0x110] sm:$0xff] %v2020_v6  ;;  %v2023_v7 = vpop.f32.mrf.mxu1  ;;  %v820_v62 = vadd.f32 %v819_v58, %v2020_v6 }
 0x141   : > { %v1487_v8 = vpop.f32.mrf.mxu0  ;;  %797 = vst [vmem:[#allocation2 + $0x38] sm:$0xff] %v2023_v7 }
 0x142   : > { %v1539_v9 = vpop.f32.mrf.mxu1 }
 0x143   : > { %v2026_v10 = vpop.f32.mrf.mxu0  ;;  %v924_v9 = vadd.f32 %v923_v1, %v876_v60 }
 0x144   : > { %772 = vst [vmem:[#allocation2 + $0x90] sm:$0xff] %v2026_v10  ;;  %v2029_v11 = vpop.f32.mrf.mxu1  ;;  %v821_v2 = vadd.f32 %v820_v62, %v2026_v10 }
 0x145   : > { %v1490_v12 = vpop.f32.mrf.mxu0  ;;  %798 = vst [vmem:[#allocation2 + $0xc0] sm:$0xff] %v2029_v11 }
 0x146   : > { %v1542_v13 = vpop.f32.mrf.mxu1  ;;  %v878_v12 = vmul.f32 %v2020_v6, %v2020_v6 }
 0x147   : > { %v2032_v14 = vpop.f32.mrf.mxu0 }
 0x148   : > { %773 = vst [vmem:[#allocation2 + $0x118] sm:$0xff] %v2032_v14  ;;  %v2035_v15 = vpop.f32.mrf.mxu1  ;;  %v880_v25 = vmul.f32 %v2032_v14, %v2032_v14  ;;  %v822_v6 = vadd.f32 %v821_v2, %v2032_v14 }
 0x149   : > { %v1491_v16 = vpop.f32.mrf.mxu0  ;;  %799 = vst [vmem:[#allocation2 + $0x30] sm:$0xff] %v2035_v15 }
 0x14a   : > { %v1543_v17 = vpop.f32.mrf.mxu1 }
 0x14b   : > { %v2038_v18 = vpop.f32.mrf.mxu0  ;;  %v925_v17 = vadd.f32 %v924_v9, %v877_v4 }
 0x14c   : > { %774 = vst [vmem:[#allocation2 + $0x148] sm:$0xff] %v2038_v18  ;;  %v2041_v19 = vpop.f32.mrf.mxu1  ;;  %v881_v30 = vmul.f32 %v2038_v18, %v2038_v18 }
 0x14d   : > { %v1494_v20 = vpop.f32.mrf.mxu0  ;;  %800 = vst [vmem:[#allocation2 + $0x78] sm:$0xff] %v2041_v19  ;;  %v926_v24 = vadd.f32 %v925_v17, %v878_v12 }
 0x14e   : > { %v1546_v22 = vpop.f32.mrf.mxu1  ;;  %v879_v20 = vmul.f32 %v2026_v10, %v2026_v10  ;;  %v823_v10 = vadd.f32 %v822_v6, %v2038_v18 }
 0x14f   : > { %v2046_v23 = vpop.f32.mrf.mxu0 }
 0x150   : > { %775 = vst [vmem:[#allocation2 + $0x100] sm:$0xff] %v2046_v23  ;;  %v2055_v27 = vpop.f32.mrf.mxu1  ;;  %v927_v29 = vadd.f32 %v926_v24, %v879_v20  ;;  %v882_v36 = vmul.f32 %v2046_v23, %v2046_v23  ;;  %v824_v14 = vadd.f32 %v823_v10, %v2046_v23 }
 0x151   : > { %v1495_v28 = vpop.f32.mrf.mxu0  ;;  %801 = vst [vmem:[#allocation2 + $0x70] sm:$0xff] %v2055_v27 }
 0x152   : > { %v1547_v32 = vpop.f32.mrf.mxu1  ;;  %v928_v34 = vadd.f32 %v927_v29, %v880_v25 }
 0x153   : > { %v2061_v33 = vpop.f32.mrf.mxu0 }
 0x154   : > { %776 = vst [vmem:[#allocation2 + $0x58] sm:$0xff] %v2061_v33  ;;  %v2067_v38 = vpop.f32.mrf.mxu1  ;;  %v929_v41 = vadd.f32 %v928_v34, %v881_v30  ;;  %v883_v42 = vmul.f32 %v2061_v33, %v2061_v33  ;;  %v825_v18 = vadd.f32 %v824_v14, %v2061_v33 }
 0x155   : > { %v1498_v40 = vpop.f32.mrf.mxu0  ;;  %802 = vst [vmem:[#allocation2] sm:$0xff] %v2067_v38 }
 0x156   : > { %v1550_v45 = vpop.f32.mrf.mxu1  ;;  %v930_v49 = vadd.f32 %v929_v41, %v882_v36 }
 0x157   : > { %v621_v48 = vpop.f32.mrf.mxu0 }
 0x158   : > { %777 = vst [vmem:[#allocation2 + $0xd8] sm:$0xff] %v621_v48  ;;  %v2076_v53 = vpop.f32.mrf.mxu1  ;;  %v884_v46 = vmul.f32 %v621_v48, %v621_v48  ;;  %v931_v57 = vadd.f32 %v930_v49, %v883_v42  ;;  %v826_v50 = vadd.f32 %v825_v18, %v621_v48 }
 0x159   : > { %v1499_v56 = vpop.f32.mrf.mxu0  ;;  %803 = vst [vmem:[#allocation2 + $0x98] sm:$0xff] %v2076_v53 }
 0x15a   : > { %v1551_v61 = vpop.f32.mrf.mxu1  ;;  %v932_v1 = vadd.f32 %v931_v57, %v884_v46 }
 0x15b   : > { %v626_v0 = vpop.f32.mrf.mxu0 }
 0x15c   : > { %778 = vst [vmem:[#allocation2 + $0x180] sm:$0xff] %v626_v0  ;;  %v2085_v5 = vpop.f32.mrf.mxu1  ;;  %v885_v60 = vmul.f32 %v626_v0, %v626_v0  ;;  %v827_v54 = vadd.f32 %v826_v50, %v626_v0 }
 0x15d   : > { %v1502_v8 = vpop.f32.mrf.mxu0  ;;  %804 = vst [vmem:[#allocation2 + $0x68] sm:$0xff] %v2085_v5 }
 0x15e   : > { %v1554_v13 = vpop.f32.mrf.mxu1  ;;  %v933_v58 = vadd.f32 %v932_v1, %v885_v60 }
 0x15f   : > { %v629_v16 = vpop.f32.mrf.mxu0 }
 0x160   : > { %779 = vst [vmem:[#allocation2 + $0x130] sm:$0xff] %v629_v16  ;;  %v2094_v21 = vpop.f32.mrf.mxu1  ;;  %v886_v4 = vmul.f32 %v629_v16, %v629_v16  ;;  %v828_v12 = vadd.f32 %v827_v54, %v629_v16 }
 0x161   : > { %v1503_v22 = vpop.f32.mrf.mxu0  ;;  %805 = vst [vmem:[#allocation2 + $0xc8] sm:$0xff] %v2094_v21 }
 0x162   : > { %v1555_v26 = vpop.f32.mrf.mxu1  ;;  %v934_v48 = vadd.f32 %v933_v58, %v886_v4 }
 0x163   : > { %v634_v28 = vpop.f32.mrf.mxu0 }
 0x164   : > { %780 = vst [vmem:[#allocation2 + $0x138] sm:$0xff] %v634_v28  ;;  %v2103_v31 = vpop.f32.mrf.mxu1  ;;  %v887_v33 = vmul.f32 %v634_v28, %v634_v28  ;;  %v829_v62 = vadd.f32 %v828_v12, %v634_v28  ;;  %v896_v12 = vmul.f32 %v1975_v39, %v1975_v39 }
 0x165   : > { %v1506_v32 = vpop.f32.mrf.mxu0  ;;  %806 = vst [vmem:[#allocation2 + $0x150] sm:$0xff] %v2103_v31 }
 0x166   : > { %v1558_v37 = vpop.f32.mrf.mxu1  ;;  %v935_v2 = vadd.f32 %v934_v48, %v887_v33  ;;  %v897_v48 = vmul.f32 %v1981_v43, %v1981_v43 }
 0x167   : > { %v637_v40 = vpop.f32.mrf.mxu0 }
 0x168   : > { %781 = vst [vmem:[#allocation2 + $0x120] sm:$0xff] %v637_v40  ;;  %v2112_v44 = vpop.f32.mrf.mxu1  ;;  %v888_v20 = vmul.f32 %v637_v40, %v637_v40  ;;  %v830_v25 = vadd.f32 %v829_v62, %v637_v40 }
 0x169   : > { %v1507_v45 = vpop.f32.mrf.mxu0  ;;  %807 = vst [vmem:[#allocation2 + $0x18] sm:$0xff] %v2112_v44 }
 0x16a   : > { %v1559_v52 = vpop.f32.mrf.mxu1  ;;  %v936_v16 = vadd.f32 %v935_v2, %v888_v20 }
 0x16b   : > { %v642_v56 = vpop.f32.mrf.mxu0 }
 0x16c   : > { %782 = vst [vmem:[#allocation2 + $0xe0] sm:$0xff] %v642_v56  ;;  %v2116_v23 = vpop.f32.mrf.mxu1  ;;  %v889_v0 = vmul.f32 %v642_v56, %v642_v56  ;;  %v831_v6 = vadd.f32 %v830_v25, %v642_v56 }
 0x16d   : > { %v1510_v61 = vpop.f32.mrf.mxu0  ;;  %808 = vst [vmem:[#allocation2 + $0x60] sm:$0xff] %v2116_v23 }
 0x16e   : > { %v1562_v8 = vpop.f32.mrf.mxu1  ;;  %v937_v10 = vadd.f32 %v936_v16, %v889_v0 }
 0x16f   : > { %v645_v9 = vpop.f32.mrf.mxu0  ;;  %v895_v8 = vmul.f32 %v1969_v35, %v1969_v35 }
 0x170   : > { %783 = vst [vmem:[#allocation2 + $0xa8] sm:$0xff] %v645_v9  ;;  %v2119_v13 = vpop.f32.mrf.mxu1  ;;  %v890_v30 = vmul.f32 %v645_v9, %v645_v9  ;;  %v832_v36 = vadd.f32 %v831_v6, %v645_v9 }
 0x171   : > { %v1511_v17 = vpop.f32.mrf.mxu0  ;;  %809 = vst [vmem:[#allocation2 + $0x8] sm:$0xff] %v2119_v13 }
 0x172   : > { %v1563_v22 = vpop.f32.mrf.mxu1  ;;  %v938_v14 = vadd.f32 %v937_v10, %v890_v30 }
 0x173   : > { %v650_v24 = vpop.f32.mrf.mxu0  ;;  %v898_v22 = vmul.f32 %v1987_v47, %v1987_v47 }
 0x174   : > { %784 = vst [vmem:[#allocation2 + $0xb8] sm:$0xff] %v650_v24  ;;  %v2122_v26 = vpop.f32.mrf.mxu1  ;;  %v891_v28 = vmul.f32 %v650_v24, %v650_v24  ;;  %v833_v40 = vadd.f32 %v832_v36, %v650_v24 }
 0x175   : > { %v1514_v29 = vpop.f32.mrf.mxu0  ;;  %810 = vst [vmem:[#allocation2 + $0x158] sm:$0xff] %v2122_v26 }
 0x176   : > { %v1566_v32 = vpop.f32.mrf.mxu1  ;;  %v939_v18 = vadd.f32 %v938_v14, %v891_v28 }
 0x177   : > { %v653_v34 = vpop.f32.mrf.mxu0 }
 0x178   : > { %785 = vst [vmem:[#allocation2 + $0x168] sm:$0xff] %v653_v34  ;;  %v757_v37 = vpop.f32.mrf.mxu1  ;;  %v892_v42 = vmul.f32 %v653_v34, %v653_v34  ;;  %v834_v46 = vadd.f32 %v833_v40, %v653_v34 }
 0x179   : > { %v1515_v41 = vpop.f32.mrf.mxu0 }
 0x17a   : > { %v1567_v45 = vpop.f32.mrf.mxu1  ;;  %v940_v56 = vadd.f32 %v939_v18, %v892_v42 }
 0x17b   : > { %v658_v49 = vpop.f32.mrf.mxu0  ;;  %v907_v45 = vmul.f32 %v2041_v19, %v2041_v19 }
 0x17c   : > { %786 = vst [vmem:[#allocation2 + $0xe8] sm:$0xff] %v658_v49  ;;  %v893_v52 = vmul.f32 %v658_v49, %v658_v49  ;;  %v835_v50 = vadd.f32 %v834_v46, %v658_v49  ;;  %v908_v46 = vmul.f32 %v2055_v27, %v2055_v27 }
 0x17d   : > { %v1518_v57 = vpop.f32.mrf.mxu0 }
 0x17e   : > { %v941_v61 = vadd.f32 %v940_v56, %v893_v52  ;;  %v909_v57 = vmul.f32 %v2067_v38, %v2067_v38 }
 0x17f   : > { %v661_v60 = vpop.f32.mrf.mxu0 }
 0x180   : > { %787 = vst [vmem:[#allocation2 + $0xf8] sm:$0xff] %v661_v60  ;;  %v836_v1 = vadd.f32 %v835_v50, %v661_v60  ;;  %v894_v54 = vmul.f32 %v661_v60, %v661_v60  ;;  %v910_v50 = vmul.f32 %v2076_v53, %v2076_v53 }
 0x181   : > { %v1519_v4 = vpop.f32.mrf.mxu0 }
 0x182   : > { %v837_v9 = vadd.f32 %v836_v1, %v1969_v35  ;;  %v942_v58 = vadd.f32 %v941_v61, %v894_v54  ;;  %v899_v35 = vmul.f32 %v1993_v51, %v1993_v51  ;;  %v911_v61 = vmul.f32 %v2085_v5, %v2085_v5 }
 0x183   : > { %v912_v54 = vmul.f32 %v2094_v21, %v2094_v21 }
 0x184   : > { %v838_v33 = vadd.f32 %v837_v9, %v1975_v39  ;;  %v943_v17 = vadd.f32 %v942_v58, %v895_v8  ;;  %v900_v39 = vmul.f32 %v1999_v55, %v1999_v55  ;;  %v913_v8 = vmul.f32 %v2103_v31, %v2103_v31 }
 0x185   : > { %v914_v58 = vmul.f32 %v2112_v44, %v2112_v44 }
 0x186   : > { %v839_v62 = vadd.f32 %v838_v33, %v1981_v43  ;;  %v944_v20 = vadd.f32 %v943_v17, %v896_v12  ;;  %v901_v43 = vmul.f32 %v2005_v59, %v2005_v59  ;;  %v915_v33 = vmul.f32 %v2116_v23, %v2116_v23 }
 0x188   : > { %v840_v24 = vadd.f32 %v839_v62, %v1987_v47  ;;  %v945_v2 = vadd.f32 %v944_v20, %v897_v48  ;;  %v902_v47 = vmul.f32 %v2011_v63, %v2011_v63  ;;  %v916_v48 = vmul.f32 %v2119_v13, %v2119_v13 }
 0x18a   : > { %v841_v25 = vadd.f32 %v840_v24, %v1993_v51  ;;  %v946_v0 = vadd.f32 %v945_v2, %v898_v22  ;;  %v903_v51 = vmul.f32 %v2017_v3, %v2017_v3 }
 0x18c   : > { %v842_v29 = vadd.f32 %v841_v25, %v1999_v55  ;;  %v947_v16 = vadd.f32 %v946_v0, %v899_v35  ;;  %v904_v55 = vmul.f32 %v2023_v7, %v2023_v7 }
 0x18e   : > { %v948_v6 = vadd.f32 %v947_v16, %v900_v39  ;;  %v843_v30 = vadd.f32 %v842_v29, %v2005_v59  ;;  %v905_v59 = vmul.f32 %v2029_v11, %v2029_v11  ;;  %v811_v16 = vld [vmem:[#allocation3] sm:$0x1] }
 0x190   : > { %v844_v32 = vadd.f32 %v843_v30, %v2011_v63  ;;  %v949_v34 = vadd.f32 %v948_v6, %v901_v43  ;;  %v906_v63 = vmul.f32 %v2035_v15, %v2035_v15 }
 0x192   : > { %v845_v10 = vadd.f32 %v844_v32, %v2017_v3  ;;  %v950_v36 = vadd.f32 %v949_v34, %v902_v47 }
 0x194   : > { %v846_v28 = vadd.f32 %v845_v10, %v2023_v7  ;;  %v951_v37 = vadd.f32 %v950_v36, %v903_v51 }
 0x196   : > { %v847_v41 = vadd.f32 %v846_v28, %v2029_v11  ;;  %v952_v14 = vadd.f32 %v951_v37, %v904_v55 }
 0x198   : > { %v848_v40 = vadd.f32 %v847_v41, %v2035_v15  ;;  %v953_v42 = vadd.f32 %v952_v14, %v905_v59 }
 0x19a   : > { %v849_v3 = vadd.f32 %v848_v40, %v2041_v19  ;;  %v954_v49 = vadd.f32 %v953_v42, %v906_v63 }
 0x19c   : > { %v955_v7 = vadd.f32 %v954_v49, %v907_v45  ;;  %v850_v18 = vadd.f32 %v849_v3, %v2055_v27 }
 0x19e   : > { %v956_v11 = vadd.f32 %v955_v7, %v908_v46  ;;  %v851_v52 = vadd.f32 %v850_v18, %v2067_v38 }
 0x1a0   : > { %v957_v15 = vadd.f32 %v956_v11, %v909_v57  ;;  %v852_v56 = vadd.f32 %v851_v52, %v2076_v53 }
 0x1a2   : > { %v958_v19 = vadd.f32 %v957_v15, %v910_v50  ;;  %v853_v60 = vadd.f32 %v852_v56, %v2085_v5 }
 0x1a4   : > { %v959_v1 = vadd.f32 %v958_v19, %v911_v61  ;;  %v854_v27 = vadd.f32 %v853_v60, %v2094_v21 }
 0x1a6   : > { %v960_v4 = vadd.f32 %v959_v1, %v912_v54  ;;  %v855_v38 = vadd.f32 %v854_v27, %v2103_v31  ;;  %v917_v31 = vmul.f32 %v2122_v26, %v2122_v26 }
 0x1a8   : > { %v961_v9 = vadd.f32 %v960_v4, %v913_v8  ;;  %v856_v53 = vadd.f32 %v855_v38, %v2112_v44 }
 0x1aa   : > { %v962_v12 = vadd.f32 %v961_v9, %v914_v58  ;;  %v857_v5 = vadd.f32 %v856_v53, %v2116_v23 }
 0x1ac   : > { %v963_v17 = vadd.f32 %v962_v12, %v915_v33  ;;  %v858_v21 = vadd.f32 %v857_v5, %v2119_v13  ;;  %v868_v13 = vld [vmem:[#allocation4] sm:$0x1] }
 0x1ae   : > { %v964_v62 = vadd.f32 %v963_v17, %v916_v48  ;;  %v859_v20 = vadd.f32 %v858_v21, %v2122_v26 }
 0x1b0   : > { %v860_v22 = vrot.slane %v859_v20, 4  ;;  %v965_v44 = vadd.f32 %v964_v62, %v917_v31 }
 0x1b2   : > { %v861_v24 = vadd.f32 %v860_v22, %v859_v20  ;;  %v966_v2 = vrot.slane %v965_v44, 4 }
 0x1b4   : > { %v862_v35 = vrot.slane %v861_v24, 2  ;;  %v967_v25 = vadd.f32 %v966_v2, %v965_v44 }
 0x1b6   : > { %v863_v0 = vadd.f32 %v862_v35, %v861_v24  ;;  %v968_v23 = vrot.slane %v967_v25, 2 }
 0x1b8   : > { %v864_v39 = vrot.slane %v863_v0, 1  ;;  %v969_v29 = vadd.f32 %v968_v23, %v967_v25 }
 0x1ba   : > { %v865_v43 = vadd.f32 %v864_v39, %v863_v0  ;;  %v970_v6 = vrot.slane %v969_v29, 1 }
 0x1bc   : > { %v866_v30 = vadd.f32 %v865_v43, %v811_v16  ;;  %v971_v47 = vadd.f32 %v970_v6, %v969_v29 }
 0x1be   : > { %867 = vst [vmem:[#allocation3] sm:$0x1] %v866_v30  ;;  %v972_v32 = vadd.f32 %v971_v47, %v868_v13 }
 0x1c0   : > { %973 = vst [vmem:[#allocation4] sm:$0x1] %v972_v32 }
 0x1c1 PF: > { %p1412_p3 = scmp.ne.s32.totalorder %s1786_s15, 1 }
 0x1c3   : > { %977 = sbr.rel (%p1412_p3) target bundleno = 538 (0x21a), region = 56 }
 0x1c8   : > { %v982_v26 = vld [vmem:[#allocation3] sm:$0x1]  ;;  %v984_v34 = vld [vmem:[#allocation4] sm:$0x1]  ;;  %v989_v59 = vld [vmem:[%s2331_s2] sm:$0x1] }
 0x1c9   : > { %v983_v51 = vmul.f32 0.0025510204, %v982_v26  ;;  %v985_v10 = vmul.f32 0.0025510204, %v984_v34  ;;  %v994_v63 = vld [vmem:[%s2332_s3] sm:$0x1] }
 0x1ca   : > { %v1000_v3 = vld [vmem:[#allocation2 + $0xb0] sm:$0xff]  ;;  %v1003_v7 = vld [vmem:[#allocation2 + $0x48] sm:$0xff]  ;;  %v1004_v18 = vld [vmem:[#allocation2 + $0x160] sm:$0xff] }
 0x1cb   : > { %v986_v36 = vmul.f32 %v983_v51, %v983_v51  ;;  %v1001_v45 = vld [vmem:[#allocation2 + $0xd0] sm:$0xff]  ;;  %v1005_v46 = vld [vmem:[#allocation2 + $0x128] sm:$0xff]  ;;  %v1006_v11 = vld [vmem:[#allocation2 + $0x40] sm:$0xff] }
 0x1cc   : > { %v1002_v49 = vld [vmem:[#allocation2 + $0x10] sm:$0xff]  ;;  %v1007_v52 = vld [vmem:[#allocation2 + $0x178] sm:$0xff]  ;;  %v1008_v57 = vld [vmem:[#allocation2 + $0x108] sm:$0xff] }
 0x1cd   : > { %v987_v55 = vsub.f32 %v985_v10, %v986_v36  ;;  %v1009_v15 = vld [vmem:[#allocation2 + $0x110] sm:$0xff]  ;;  %v1011_v19 = vld [vmem:[#allocation2 + $0x118] sm:$0xff]  ;;  %v1012_v60 = vld [vmem:[#allocation2 + $0x148] sm:$0xff] }
 0x1ce   : > { %v1010_v56 = vld [vmem:[#allocation2 + $0x90] sm:$0xff]  ;;  %v1013_v4 = vld [vmem:[#allocation2 + $0x100] sm:$0xff]  ;;  %v1014_v38 = vld [vmem:[#allocation2 + $0x58] sm:$0xff] }
 0x1cf   : > { %v988_v28 = vmax.f32 %v987_v55, 0.0  ;;  %v1015_v8 = vld [vmem:[#allocation2 + $0xd8] sm:$0xff]  ;;  %v1016_v36 = vld [vmem:[#allocation2 + $0x180] sm:$0xff]  ;;  %v1017_v55 = vld [vmem:[#allocation2 + $0x130] sm:$0xff] }
 0x1d1   : > { %v990_v37 = vadd.f32 1e-05, %v988_v28  ;;  %v1018_v28 = vld [vmem:[#allocation2 + $0x138] sm:$0xff] }
 0x1d3   : > { %1682 = vrsqrt.f32 %v990_v37 }
 0x1e0   : > { %v1683_v41 = vpop.eup %1682 }
 0x1e1   : > { %v992_v14 = vmul.f32 %v1683_v41, %v989_v59 }
 0x1e3   : > { %993 = vst [vmem:[#allocation5] sm:$0x1] %v992_v14  ;;  %v995_v40 = vmul.f32 %v992_v14, %v983_v51 }
 0x1e5   : > { %v996_v42 = vsub.f32 %v994_v63, %v995_v40  ;;  %v1019_v63 = vld [vmem:[#allocation2 + $0x120] sm:$0xff] }
 0x1e6   : > { %v1020_v40 = vld [vmem:[#allocation2 + $0xe0] sm:$0xff] }
 0x1e7   : > { %997 = vst [vmem:[#allocation6] sm:$0x1] %v996_v42  ;;  %v1021_v42 = vld [vmem:[#allocation2 + $0xa8] sm:$0xff] }
 0x1ea   : > { %v2201_v50 = vld [vmem:[#allocation5] ss:$0 sm:$0xff] }
 0x1eb   : > { %v1056_v61 = vmul.f32 %v2201_v50, %v1000_v3  ;;  %v1057_v1 = vmul.f32 %v2201_v50, %v1001_v45  ;;  %v1058_v27 = vmul.f32 %v2201_v50, %v1002_v49  ;;  %v1059_v54 = vmul.f32 %v2201_v50, %v1003_v7 }
 0x1ec   : > { %v1060_v9 = vmul.f32 %v2201_v50, %v1004_v18  ;;  %v1061_v53 = vmul.f32 %v2201_v50, %v1005_v46  ;;  %v1062_v58 = vmul.f32 %v2201_v50, %v1006_v11  ;;  %v1063_v12 = vmul.f32 %v2201_v50, %v1007_v52  ;;  %v1022_v18 = vld [vmem:[#allocation2 + $0xb8] sm:$0xff]  ;;  %v1023_v46 = vld [vmem:[#allocation2 + $0x168] sm:$0xff] }
 0x1ed   : > { %v1064_v5 = vmul.f32 %v2201_v50, %v1008_v57  ;;  %v1065_v33 = vmul.f32 %v2201_v50, %v1009_v15  ;;  %v1066_v17 = vmul.f32 %v2201_v50, %v1010_v56  ;;  %v1067_v21 = vmul.f32 %v2201_v50, %v1011_v19 }
 0x1ee   : > { %v2215_v48 = vld [vmem:[#allocation6] ss:$0 sm:$0xff]  ;;  %v1068_v31 = vmul.f32 %v2201_v50, %v1012_v60  ;;  %v1069_v62 = vmul.f32 %v2201_v50, %v1013_v4  ;;  %v1070_v20 = vmul.f32 %v2201_v50, %v1014_v38  ;;  %v1071_v22 = vmul.f32 %v2201_v50, %v1015_v8 }
 0x1ef   : > { %v1112_v44 = vadd.f32 %v2215_v48, %v1056_v61  ;;  %v1113_v24 = vadd.f32 %v2215_v48, %v1057_v1  ;;  %v1114_v2 = vadd.f32 %v2215_v48, %v1058_v27  ;;  %v1115_v35 = vadd.f32 %v2215_v48, %v1059_v54 }
 0x1f0   : > { %v1116_v25 = vadd.f32 %v2215_v48, %v1060_v9  ;;  %v1117_v0 = vadd.f32 %v2215_v48, %v1061_v53  ;;  %v1118_v23 = vadd.f32 %v2215_v48, %v1062_v58  ;;  %v1119_v39 = vadd.f32 %v2215_v48, %v1063_v12  ;;  %v1024_v58 = vld [vmem:[#allocation2 + $0xe8] sm:$0xff]  ;;  %v1025_v12 = vld [vmem:[#allocation2 + $0xf8] sm:$0xff] }
 0x1f1   : > { %v1161_v29 = vmax.f32 %v1112_v44, 0.0  ;;  %v1162_v16 = vmax.f32 %v1113_v24, 0.0  ;;  %v1163_v43 = vmax.f32 %v1114_v2, 0.0  ;;  %v1164_v6 = vmax.f32 %v1115_v35, 0.0 }
 0x1f2   : > { %v1165_v13 = vmax.f32 %v1116_v25, 0.0  ;;  %v1166_v30 = vmax.f32 %v1117_v0, 0.0  ;;  %v1167_v47 = vmax.f32 %v1118_v23, 0.0  ;;  %v1168_v32 = vmax.f32 %v1119_v39, 0.0  ;;  %v1030_v25 = vld [vmem:[#allocation2 + $0xf0] sm:$0xff]  ;;  %v1031_v0 = vld [vmem:[#allocation2 + $0x140] sm:$0xff] }
 0x1f3   : > { %1210 = vst [vmem:[#allocation12] sm:$0xff] %v1161_v29  ;;  %1211 = vst [vmem:[#allocation12 + $0x8] sm:$0xff] %v1162_v16  ;;  %v1120_v26 = vadd.f32 %v2215_v48, %v1064_v5  ;;  %v1121_v34 = vadd.f32 %v2215_v48, %v1065_v33  ;;  %v1122_v51 = vadd.f32 %v2215_v48, %v1066_v17  ;;  %v1026_v5 = vld [vmem:[#allocation2 + $0x20] sm:$0xff] }
 0x1f4   : > { %1212 = vst [vmem:[#allocation12 + $0x10] sm:$0xff] %v1163_v43  ;;  %1213 = vst [vmem:[#allocation12 + $0x18] sm:$0xff] %v1164_v6  ;;  %v1123_v10 = vadd.f32 %v2215_v48, %v1067_v21  ;;  %v1124_v37 = vadd.f32 %v2215_v48, %v1068_v31  ;;  %v1125_v59 = vadd.f32 %v2215_v48, %v1069_v62  ;;  %v1027_v62 = vld [vmem:[#allocation2 + $0x88] sm:$0xff] }
 0x1f5   : > { %1214 = vst [vmem:[#allocation12 + $0x20] sm:$0xff] %v1165_v13  ;;  %1215 = vst [vmem:[#allocation12 + $0x28] sm:$0xff] %v1166_v30  ;;  %v1126_v41 = vadd.f32 %v2215_v48, %v1070_v20  ;;  %v1127_v14 = vadd.f32 %v2215_v48, %v1071_v22  ;;  %v1169_v3 = vmax.f32 %v1120_v26, 0.0  ;;  %v1170_v45 = vmax.f32 %v1121_v34, 0.0  ;;  %v1028_v20 = vld [vmem:[#allocation2 + $0xa0] sm:$0xff]  ;;  %v1029_v22 = vld [vmem:[#allocation2 + $0x170] sm:$0xff] }
 0x1f6   : > { %1216 = vst [vmem:[#allocation12 + $0x30] sm:$0xff] %v1167_v47  ;;  %1217 = vst [vmem:[#allocation12 + $0x38] sm:$0xff] %v1168_v32  ;;  %v1171_v49 = vmax.f32 %v1122_v51, 0.0  ;;  %v1172_v7 = vmax.f32 %v1123_v10, 0.0  ;;  %v1173_v11 = vmax.f32 %v1124_v37, 0.0  ;;  %v1174_v52 = vmax.f32 %v1125_v59, 0.0 }
 0x1f7   : > { %v1175_v57 = vmax.f32 %v1126_v41, 0.0  ;;  %v1176_v15 = vmax.f32 %v1127_v14, 0.0  ;;  %1218 = vst [vmem:[#allocation12 + $0x40] sm:$0xff] %v1169_v3  ;;  %1219 = vst [vmem:[#allocation12 + $0x48] sm:$0xff] %v1170_v45  ;;  %v1072_v56 = vmul.f32 %v2201_v50, %v1016_v36  ;;  %v1073_v19 = vmul.f32 %v2201_v50, %v1017_v55  ;;  %v1033_v37 = vld [vmem:[#allocation2 + $0x80] sm:$0xff]  ;;  %v1034_v59 = vld [vmem:[#allocation2 + $0x28] sm:$0xff] }
 0x1f8   : > { %1220 = vst [vmem:[#allocation12 + $0x50] sm:$0xff] %v1171_v49  ;;  %1221 = vst [vmem:[#allocation12 + $0x58] sm:$0xff] %v1172_v7  ;;  %v1074_v60 = vmul.f32 %v2201_v50, %v1018_v28  ;;  %v1075_v61 = vmul.f32 %v2201_v50, %v1019_v63  ;;  %v1076_v1 = vmul.f32 %v2201_v50, %v1020_v40  ;;  %v1032_v28 = vld [vmem:[#allocation2 + $0x50] sm:$0xff]  ;;  %v1036_v3 = vld [vmem:[#allocation2 + $0xc0] sm:$0xff] }
 0x1f9   : > { %1222 = vst [vmem:[#allocation12 + $0x60] sm:$0xff] %v1173_v11  ;;  %1223 = vst [vmem:[#allocation12 + $0x68] sm:$0xff] %v1174_v52  ;;  %v1077_v27 = vmul.f32 %v2201_v50, %v1021_v42  ;;  %v1078_v54 = vmul.f32 %v2201_v50, %v1022_v18  ;;  %v1079_v4 = vmul.f32 %v2201_v50, %v1023_v46  ;;  %v1035_v42 = vld [vmem:[#allocation2 + $0x38] sm:$0xff]  ;;  %v1037_v45 = vld [vmem:[#allocation2 + $0x30] sm:$0xff] }
 0x1fa   : > { %1224 = vst [vmem:[#allocation12 + $0x70] sm:$0xff] %v1175_v57  ;;  %1225 = vst [vmem:[#allocation12 + $0x78] sm:$0xff] %v1176_v15  ;;  %v1128_v38 = vadd.f32 %v2215_v48, %v1072_v56  ;;  %v1129_v8 = vadd.f32 %v2215_v48, %v1073_v19  ;;  %v1130_v9 = vadd.f32 %v2215_v48, %v1074_v60  ;;  %v1038_v11 = vld [vmem:[#allocation2 + $0x78] sm:$0xff]  ;;  %v1039_v52 = vld [vmem:[#allocation2 + $0x70] sm:$0xff] }
 0x1fb   : > { %v1131_v53 = vadd.f32 %v2215_v48, %v1075_v61  ;;  %v1132_v33 = vadd.f32 %v2215_v48, %v1076_v1  ;;  %v1133_v17 = vadd.f32 %v2215_v48, %v1077_v27  ;;  %v1134_v21 = vadd.f32 %v2215_v48, %v1078_v54 }
 0x1fc   : > { %v1135_v31 = vadd.f32 %v2215_v48, %v1079_v4  ;;  %v1177_v44 = vmax.f32 %v1128_v38, 0.0  ;;  %v1178_v24 = vmax.f32 %v1129_v8, 0.0  ;;  %v1179_v2 = vmax.f32 %v1130_v9, 0.0 }
 0x1fd   : > { %v1180_v35 = vmax.f32 %v1131_v53, 0.0  ;;  %v1181_v23 = vmax.f32 %v1132_v33, 0.0  ;;  %v1182_v39 = vmax.f32 %v1133_v17, 0.0  ;;  %v1183_v29 = vmax.f32 %v1134_v21, 0.0  ;;  %v1041_v33 = vld [vmem:[#allocation2 + $0x98] sm:$0xff]  ;;  %v1042_v17 = vld [vmem:[#allocation2 + $0x68] sm:$0xff] }
 0x1fe   : > { %v1184_v16 = vmax.f32 %v1135_v31, 0.0  ;;  %1226 = vst [vmem:[#allocation12 + $0x80] sm:$0xff] %v1177_v44  ;;  %1227 = vst [vmem:[#allocation12 + $0x88] sm:$0xff] %v1178_v24  ;;  %v1080_v43 = vmul.f32 %v2201_v50, %v1024_v58  ;;  %v1081_v6 = vmul.f32 %v2201_v50, %v1025_v12  ;;  %v1082_v13 = vmul.f32 %v2201_v50, %v1026_v5  ;;  %v1040_v5 = vld [vmem:[#allocation2] sm:$0xff]  ;;  %v1044_v44 = vld [vmem:[#allocation2 + $0x150] sm:$0xff] }
 0x1ff   : > { %1228 = vst [vmem:[#allocation12 + $0x90] sm:$0xff] %v1179_v2  ;;  %1229 = vst [vmem:[#allocation12 + $0x98] sm:$0xff] %v1180_v35  ;;  %v1083_v30 = vmul.f32 %v2201_v50, %v1027_v62  ;;  %v1084_v47 = vmul.f32 %v2201_v50, %v1028_v20  ;;  %v1085_v32 = vmul.f32 %v2201_v50, %v1029_v22  ;;  %v1043_v22 = vld [vmem:[#allocation2 + $0xc8] sm:$0xff]  ;;  %v1045_v24 = vld [vmem:[#allocation2 + $0x18] sm:$0xff] }
 0x200   : > { %1230 = vst [vmem:[#allocation12 + $0xa0] sm:$0xff] %v1181_v23  ;;  %1231 = vst [vmem:[#allocation12 + $0xa8] sm:$0xff] %v1182_v39  ;;  %v1086_v26 = vmul.f32 %v2201_v50, %v1030_v25  ;;  %v1087_v34 = vmul.f32 %v2201_v50, %v1031_v0  ;;  %v1136_v51 = vadd.f32 %v2215_v48, %v1080_v43  ;;  %v1046_v23 = vld [vmem:[#allocation2 + $0x60] sm:$0xff]  ;;  %v1047_v39 = vld [vmem:[#allocation2 + $0x8] sm:$0xff] }
 0x201   : > { %1232 = vst [vmem:[#allocation12 + $0xb0] sm:$0xff] %v1183_v29  ;;  %1233 = vst [vmem:[#allocation12 + $0xb8] sm:$0xff] %v1184_v16  ;;  %v1137_v10 = vadd.f32 %v2215_v48, %v1081_v6  ;;  %v1138_v36 = vadd.f32 %v2215_v48, %v1082_v13  ;;  %v1139_v55 = vadd.f32 %v2215_v48, %v1083_v30 }
 0x202   : > { %v1140_v41 = vadd.f32 %v2215_v48, %v1084_v47  ;;  %v1141_v14 = vadd.f32 %v2215_v48, %v1085_v32  ;;  %v1142_v63 = vadd.f32 %v2215_v48, %v1086_v26  ;;  %v1143_v40 = vadd.f32 %v2215_v48, %v1087_v34 }
 0x203   : > { %v1185_v49 = vmax.f32 %v1136_v51, 0.0  ;;  %v1186_v7 = vmax.f32 %v1137_v10, 0.0  ;;  %v1187_v18 = vmax.f32 %v1138_v36, 0.0  ;;  %v1188_v46 = vmax.f32 %v1139_v55, 0.0 }
 0x204   : > { %v1189_v57 = vmax.f32 %v1140_v41, 0.0  ;;  %v1190_v15 = vmax.f32 %v1141_v14, 0.0  ;;  %v1191_v56 = vmax.f32 %v1142_v63, 0.0  ;;  %v1192_v19 = vmax.f32 %v1143_v40, 0.0  ;;  %v1048_v40 = vld [vmem:[#allocation2 + $0x158] sm:$0xff] }
 0x205   : > { %1234 = vst [vmem:[#allocation12 + $0xc0] sm:$0xff] %v1185_v49  ;;  %1235 = vst [vmem:[#allocation12 + $0xc8] sm:$0xff] %v1186_v7  ;;  %v1088_v60 = vmul.f32 %v2201_v50, %v1032_v28  ;;  %v1089_v61 = vmul.f32 %v2201_v50, %v1033_v37  ;;  %v1090_v1 = vmul.f32 %v2201_v50, %v1034_v59 }
 0x206   : > { %1236 = vst [vmem:[#allocation12 + $0xd0] sm:$0xff] %v1187_v18  ;;  %1237 = vst [vmem:[#allocation12 + $0xd8] sm:$0xff] %v1188_v46  ;;  %v1091_v27 = vmul.f32 %v2201_v50, %v1035_v42  ;;  %v1092_v54 = vmul.f32 %v2201_v50, %v1036_v3  ;;  %v1093_v4 = vmul.f32 %v2201_v50, %v1037_v45 }
 0x207   : > { %1238 = vst [vmem:[#allocation12 + $0xe0] sm:$0xff] %v1189_v57  ;;  %1239 = vst [vmem:[#allocation12 + $0xe8] sm:$0xff] %v1190_v15  ;;  %v1094_v38 = vmul.f32 %v2201_v50, %v1038_v11  ;;  %v1095_v8 = vmul.f32 %v2201_v50, %v1039_v52  ;;  %v1144_v9 = vadd.f32 %v2215_v48, %v1088_v60 }
 0x208   : > { %1240 = vst [vmem:[#allocation12 + $0xf0] sm:$0xff] %v1191_v56  ;;  %1241 = vst [vmem:[#allocation12 + $0xf8] sm:$0xff] %v1192_v19  ;;  %v1145_v53 = vadd.f32 %v2215_v48, %v1089_v61  ;;  %v1146_v58 = vadd.f32 %v2215_v48, %v1090_v1  ;;  %v1147_v12 = vadd.f32 %v2215_v48, %v1091_v27 }
 0x209   : > { %v1148_v21 = vadd.f32 %v2215_v48, %v1092_v54  ;;  %v1149_v31 = vadd.f32 %v2215_v48, %v1093_v4  ;;  %v1150_v62 = vadd.f32 %v2215_v48, %v1094_v38  ;;  %v1151_v20 = vadd.f32 %v2215_v48, %v1095_v8 }
 0x20a   : > { %v1193_v2 = vmax.f32 %v1144_v9, 0.0  ;;  %v1194_v35 = vmax.f32 %v1145_v53, 0.0  ;;  %v1195_v25 = vmax.f32 %v1146_v58, 0.0  ;;  %v1196_v0 = vmax.f32 %v1147_v12, 0.0 }
 0x20b   : > { %v1197_v29 = vmax.f32 %v1148_v21, 0.0  ;;  %v1198_v16 = vmax.f32 %v1149_v31, 0.0  ;;  %v1199_v43 = vmax.f32 %v1150_v62, 0.0  ;;  %v1200_v6 = vmax.f32 %v1151_v20, 0.0 }
 0x20c   : > { %1242 = vst [vmem:[#allocation12 + $0x100] sm:$0xff] %v1193_v2  ;;  %1243 = vst [vmem:[#allocation12 + $0x108] sm:$0xff] %v1194_v35  ;;  %v1096_v13 = vmul.f32 %v2201_v50, %v1040_v5  ;;  %v1097_v30 = vmul.f32 %v2201_v50, %v1041_v33  ;;  %v1098_v47 = vmul.f32 %v2201_v50, %v1042_v17 }
 0x20d   : > { %1244 = vst [vmem:[#allocation12 + $0x110] sm:$0xff] %v1195_v25  ;;  %1245 = vst [vmem:[#allocation12 + $0x118] sm:$0xff] %v1196_v0  ;;  %v1099_v32 = vmul.f32 %v2201_v50, %v1043_v22  ;;  %v1100_v26 = vmul.f32 %v2201_v50, %v1044_v44  ;;  %v1101_v34 = vmul.f32 %v2201_v50, %v1045_v24 }
 0x20e   : > { %1246 = vst [vmem:[#allocation12 + $0x120] sm:$0xff] %v1197_v29  ;;  %1247 = vst [vmem:[#allocation12 + $0x128] sm:$0xff] %v1198_v16  ;;  %v1102_v51 = vmul.f32 %v2201_v50, %v1046_v23  ;;  %v1103_v10 = vmul.f32 %v2201_v50, %v1047_v39  ;;  %v1152_v36 = vadd.f32 %v2215_v48, %v1096_v13 }
 0x20f   : > { %1248 = vst [vmem:[#allocation12 + $0x130] sm:$0xff] %v1199_v43  ;;  %1249 = vst [vmem:[#allocation12 + $0x138] sm:$0xff] %v1200_v6  ;;  %v1153_v55 = vadd.f32 %v2215_v48, %v1097_v30  ;;  %v1154_v28 = vadd.f32 %v2215_v48, %v1098_v47  ;;  %v1155_v37 = vadd.f32 %v2215_v48, %v1099_v32 }
 0x210   : > { %v1156_v59 = vadd.f32 %v2215_v48, %v1100_v26  ;;  %v1157_v41 = vadd.f32 %v2215_v48, %v1101_v34  ;;  %v1158_v14 = vadd.f32 %v2215_v48, %v1102_v51  ;;  %v1159_v63 = vadd.f32 %v2215_v48, %v1103_v10 }
 0x211   : > { %v1201_v42 = vmax.f32 %v1152_v36, 0.0  ;;  %v1202_v3 = vmax.f32 %v1153_v55, 0.0  ;;  %v1203_v45 = vmax.f32 %v1154_v28, 0.0  ;;  %v1204_v49 = vmax.f32 %v1155_v37, 0.0 }
 0x212   : > { %v1205_v7 = vmax.f32 %v1156_v59, 0.0  ;;  %v1206_v18 = vmax.f32 %v1157_v41, 0.0  ;;  %v1207_v46 = vmax.f32 %v1158_v14, 0.0  ;;  %v1208_v11 = vmax.f32 %v1159_v63, 0.0 }
 0x213   : > { %1250 = vst [vmem:[#allocation12 + $0x140] sm:$0xff] %v1201_v42  ;;  %1251 = vst [vmem:[#allocation12 + $0x148] sm:$0xff] %v1202_v3  ;;  %v1104_v52 = vmul.f32 %v2201_v50, %v1048_v40 }
 0x214   : > { %1252 = vst [vmem:[#allocation12 + $0x150] sm:$0xff] %v1203_v45  ;;  %1253 = vst [vmem:[#allocation12 + $0x158] sm:$0xff] %v1204_v49 }
 0x215   : > { %1254 = vst [vmem:[#allocation12 + $0x160] sm:$0xff] %v1205_v7  ;;  %1255 = vst [vmem:[#allocation12 + $0x168] sm:$0xff] %v1206_v18  ;;  %v1160_v57 = vadd.f32 %v2215_v48, %v1104_v52 }
 0x216   : > { %1256 = vst [vmem:[#allocation12 + $0x170] sm:$0xff] %v1207_v46  ;;  %1257 = vst [vmem:[#allocation12 + $0x178] sm:$0xff] %v1208_v11 }
 0x217   : > { %v1209_v15 = vmax.f32 %v1160_v57, 0.0 }
 0x219   : > { %1258 = vst [vmem:[#allocation12 + $0x180] sm:$0xff] %v1209_v15 }
 0x21a PF: > { %p2305_p9 = scmp.eq.s32.totalorder %s1369_s18, 1  ;;  %s1802_s21 = smov [#allocation12]  }
 0x21b   : > { %s1274_s22 = sshll.u32 %s1802_s21, 4  ;;  %s1275_s22 = int_to_ptr.vmem [resolvable:$true] %s1274_s22 }
 0x21c   : > { %s1736_s23 = scalar_lea.vmem %s1275_s22, 6272  ;;  %s1742_s24 = scalar_lea.vmem %s1275_s22, 12544 }
 0x21d   : > { %p1737_p5 = scmp.ne.s32.totalorder %s1275_s22, %s1736_s23  ;;  %p1743_p4 = scmp.lt.s32.totalorder %s1275_s22, %s1275_s22 }
 0x21e   : > { %p1744_p12 = scmp.lt.s32.totalorder %s1742_s24, %s1736_s23 }
 0x21f   : > { %p1738_p10 = pnand %p1737_p5, %p2305_p9 }
 0x220   : > { %p1745_p13 = por %p1744_p12, %p1743_p4 }
 0x221   : > { %p1739_p11 = pneg %p1738_p10 }
 0x223   : > { %p1746_p0 = pnand %p1745_p13, %p1739_p11 }
 0x225   : > { %1749 = shalt.err (!%p1746_p0)
}
 0x226   : > { %s1803_s25 = smov 128   ;;  %s1804_s18 = smov 8  }
 0x227   : > { %1593 = dma.vmem_to_hbm [thread:$0]  (%p2305_p9), %s1275_s22, 6272, %s2333_s4, [#allocation9], %s1803_s25, %s1803_s25, %s1804_s18  }
 0x228 PF: > { %p1615_p1 = scmp.eq.s32.totalorder %s1370_s19, 1 }
 0x22a   : > { %p1605_p2 = pnand %p1615_p1, %p1373_p6 }
 0x22c   : > { %p1606_p7 = pneg %p1605_p2 }
 0x22e   : > { %1781 = dma.done.wait (%p1606_p7), [#allocation9], 6272  }
 0x22f   : > { %1783 = vsyncadd (%p1606_p7), [#allocation9], 4294961024  ;;  %s21_s17 = sadd.s32 1, %s1794_s17   ;;  %s2340_s15 = smov %s1790_s16 }
 0x230   : > { %p18_p8 = scmp.ge.s32.totalorder %s21_s17, 4   ;;  %s2341_s16 = smov %s2343_s20 }
 0x232   :  { %20 = sbr.rel (!%p18_p8) target bundleno = 6 (0x6), region = 103 }
 0x237   :  { %1295 = vsyncpa [#allocation8], 1 }
 0x238   :  { %1297 = vsyncpa [#allocation8 + $0x1], 1 }
 0x239   :  { %1298 = vsyncpa [#allocation11], 1 }
 0x23a   :  { %1299 = vsyncpa [#allocation9], 1 }
 0x23b   :  { %1301 = vsyncpa [#allocation9 + $0x1], 1 }

</bundles_post_ra>
